<compile_context>
chip_gen: v6e
topology: v6e:2x2x1
jax: 0.10.0
libtpu: 0.0.40
codegen_flags: <defaults>
</compile_context>

<pallas_src>
import jax
import jax.numpy as jnp
from jax.experimental import pallas as pl
from jax.experimental.pallas import tpu as pltpu


def _complex_conv_kernel(w_ref, x_ref, o_ref):
    # w_ref : (2*Cout, K+1)   [wr ; wi] with bias column appended
    # x_ref : (K+1, 2*HW)     [xr | xi] im2col patches (+ ones row), one batch elem
    # o_ref : (2*Cout, HW)    rows 0:Cout = real, rows Cout: = imag
    cout2, hw = o_ref.shape
    cout = cout2 // 2

    # Single deep contraction covering all four complex products + bias add.
    p = jnp.dot(w_ref[...], x_ref[...], preferred_element_type=jnp.float32)

    real = p[:cout, :hw] - p[cout:, hw:]   # rconv(x_real) - iconv(x_imag)
    imag = p[:cout, hw:] + p[cout:, :hw]   # rconv(x_imag) + iconv(x_real)
    o_ref[...] = jnp.concatenate([real, imag], axis=0).astype(o_ref.dtype)


def complex_conv_pallas(x, wr, br, wi, bi, *, ks=3, stride=1, padding=1):
    """x: (N, Cin, H, W) complex64.  Weights in PyTorch OIHW layout."""
    assert stride == 1, "only stride=1 is implemented (matches module defaults)"
    n, cin, h, w = x.shape
    cout = wr.shape[0]
    kh = kw = ks
    kk = kh * kw
    hw = h * w
    k_dim = kk * cin
    kp1 = k_dim + 1          # + ones row / bias column

    xr = jnp.real(x).astype(jnp.float32)
    xi = jnp.imag(x).astype(jnp.float32)

    # --- XLA glue: im2col, HW-last layout, tap-major / cin-minor K order ---
    # TODO(synk): for large H*W / Cin the whole-image block should be tiled
    # along HW (and im2col moved in-kernel) to respect v7x's 64 MiB VMEM.
    def im2col(a):  # (N, Cin, H, W) -> (N, KK*Cin, HW)
        ap = jnp.pad(a, ((0, 0), (0, 0), (padding, padding), (padding, padding)))
        taps = [ap[:, :, di:di + h, dj:dj + w].reshape(n, cin, hw)
                for di in range(kh) for dj in range(kw)]
        p = jnp.stack(taps, axis=1)            # (N, KK, Cin, HW)
        return p.reshape(n, k_dim, hw)

    xr_p = im2col(xr)
    xi_p = im2col(xi)
    x_stack = jnp.concatenate([xr_p, xi_p], axis=2)        # (N, K, 2*HW)
    ones = jnp.ones((n, 1, 2 * hw), jnp.float32)
    x_aug = jnp.concatenate([x_stack, ones], axis=1)       # (N, K+1, 2*HW)

    def wflat(wt):  # (Cout, Cin, KH, KW) -> (Cout, KK*Cin), matching patch K order
        return jnp.transpose(wt, (0, 2, 3, 1)).reshape(cout, k_dim).astype(jnp.float32)

    w_stack = jnp.concatenate([wflat(wr), wflat(wi)], axis=0)          # (2*Cout, K)
    b_col = jnp.concatenate([br, bi], axis=0).reshape(2 * cout, 1).astype(jnp.float32)
    w_aug = jnp.concatenate([w_stack, b_col], axis=1)                  # (2*Cout, K+1)

    out = pl.pallas_call(
        _complex_conv_kernel,
        out_shape=jax.ShapeDtypeStruct((n, 2 * cout, hw), jnp.float32),
        grid_spec=pltpu.PrefetchScalarGridSpec(
            num_scalar_prefetch=0,
            grid=(n,),
            in_specs=[
                pl.BlockSpec((2 * cout, kp1), lambda b: (0, 0)),
                pl.BlockSpec((pl.Squeezed(), kp1, 2 * hw), lambda b: (b, 0, 0)),
            ],
            out_specs=pl.BlockSpec((pl.Squeezed(), 2 * cout, hw),
                                   lambda b: (b, 0, 0)),
        ),
        compiler_params=pltpu.CompilerParams(
            dimension_semantics=("parallel",)),
    )(w_aug, x_aug)

    out = out.reshape(n, 2, cout, h, w)        # (N, [real|imag], Cout, H, W)
    return (out[:, 0] + 1j * out[:, 1]).astype(jnp.complex64)


def _conv2d_ref(a, wt, b):
    y = jax.lax.conv_general_dilated(
        a, wt, window_strides=(1, 1), padding=((1, 1), (1, 1)),
        dimension_numbers=("NCHW", "OIHW", "NCHW"))
    return y + b[None, :, None, None]


if __name__ == "__main__":
    N, Cin, Cout, H, W, KS = 2, 4, 4, 16, 16, 3

    key = jax.random.PRNGKey(0)
    k_xr, k_xi, k_wr, k_br, k_wi, k_bi = jax.random.split(key, 6)

    # Deterministic parameter init (PyTorch Conv2d-style uniform bounds).
    fan_in = Cin * KS * KS
    bound = 1.0 / (fan_in ** 0.5)
    wr = jax.random.uniform(k_wr, (Cout, Cin, KS, KS), jnp.float32, -bound, bound)
    br = jax.random.uniform(k_br, (Cout,), jnp.float32, -bound, bound)
    wi = jax.random.uniform(k_wi, (Cout, Cin, KS, KS), jnp.float32, -bound, bound)
    bi = jax.random.uniform(k_bi, (Cout,), jnp.float32, -bound, bound)

    xr_in = jax.random.normal(k_xr, (N, Cin, H, W), jnp.float32)
    xi_in = jax.random.normal(k_xi, (N, Cin, H, W), jnp.float32)
    x = (xr_in + 1j * xi_in).astype(jnp.complex64)

    out = complex_conv_pallas(x, wr, br, wi, bi, ks=KS, stride=1, padding=1)
    out = jax.block_until_ready(out)

    # Reference: same complex-conv semantics via lax.conv on real/imag parts.
    ref_real = _conv2d_ref(xr_in, wr, br) - _conv2d_ref(xi_in, wi, bi)
    ref_imag = _conv2d_ref(xi_in, wr, br) + _conv2d_ref(xr_in, wi, bi)

    assert out.shape == (N, Cout, H, W) and out.dtype == jnp.complex64
    assert jnp.allclose(jnp.real(out), ref_real, atol=1e-4, rtol=1e-4)
    assert jnp.allclose(jnp.imag(out), ref_imag, atol=1e-4, rtol=1e-4)

    print("KERNEL_OK")
</pallas_src>

<mosaic_0001>
module attributes {stable_mosaic.version = 11 : i64} {
  func.func @_complex_conv_kernel(%arg0: i32, %arg1: memref<8x37xf32, #tpu.memory_space<vmem>>, %arg2: memref<1x37x512xf32, #tpu.memory_space<vmem>>, %arg3: memref<1x8x256xf32, #tpu.memory_space<vmem>>) attributes {dimension_semantics = [#tpu.dimension_semantics<parallel>], iteration_bounds = array<i64: 2>, scalar_prefetch = 0 : i64, scratch_operands = 0 : i64, tpu.core_type = #tpu.core_type<tc>, window_params = [{pipeline_mode = #tpu.pipeline_mode<synchronous>, transform_indices = @transform_0, window_bounds = array<i64: 8, 37>}, {transform_indices = @transform_1, window_bounds = array<i64: 1, 37, 512>}, {transform_indices = @transform_2, window_bounds = array<i64: 1, 8, 256>}]} {
    %c0 = arith.constant 0 : index
    %c0_0 = arith.constant 0 : index
    %0 = vector.load %arg1[%c0, %c0_0] : memref<8x37xf32, #tpu.memory_space<vmem>>, vector<8x37xf32>
    %c0_1 = arith.constant 0 : index
    %c0_2 = arith.constant 0 : index
    %c0_3 = arith.constant 0 : index
    %1 = vector.load %arg2[%c0_1, %c0_2, %c0_3] : memref<1x37x512xf32, #tpu.memory_space<vmem>>, vector<1x37x512xf32>
    %2 = vector.shape_cast %1 : vector<1x37x512xf32> to vector<37x512xf32>
    %cst = arith.constant dense<0.000000e+00> : vector<8x512xf32>
    %3 = tpu.matmul %0, %2, %cst {dimension_numbers = #tpu.dot_dimension_numbers<[1], [0], [0], [1], [0, 0, 1, 1], [], []>} : vector<8x37xf32>, vector<37x512xf32>, vector<8x512xf32> -> vector<8x512xf32>
    %4 = vector.extract_strided_slice %3 {offsets = [0, 0], sizes = [4, 256], strides = [1, 1]} : vector<8x512xf32> to vector<4x256xf32>
    %5 = vector.extract_strided_slice %3 {offsets = [4, 256], sizes = [4, 256], strides = [1, 1]} : vector<8x512xf32> to vector<4x256xf32>
    %6 = arith.subf %4, %5 : vector<4x256xf32>
    %7 = vector.extract_strided_slice %3 {offsets = [0, 256], sizes = [4, 256], strides = [1, 1]} : vector<8x512xf32> to vector<4x256xf32>
    %8 = vector.extract_strided_slice %3 {offsets = [4, 0], sizes = [4, 256], strides = [1, 1]} : vector<8x512xf32> to vector<4x256xf32>
    %9 = arith.addf %7, %8 : vector<4x256xf32>
    %10 = tpu.concatenate %6, %9 in 0 : vector<4x256xf32>, vector<4x256xf32> -> vector<8x256xf32>
    %c0_4 = arith.constant 0 : index
    %c0_5 = arith.constant 0 : index
    %c0_6 = arith.constant 0 : index
    %11 = vector.load %arg3[%c0_4, %c0_5, %c0_6] : memref<1x8x256xf32, #tpu.memory_space<vmem>>, vector<1x8x256xf32>
    %12 = vector.shape_cast %11 : vector<1x8x256xf32> to vector<8x256xf32>
    %13 = vector.shape_cast %10 : vector<8x256xf32> to vector<1x8x256xf32>
    tpu.vector_store %arg3[%c0_4, %c0_5, %c0_6], %13 {strides = array<i32>} : memref<1x8x256xf32, #tpu.memory_space<vmem>>, vector<1x8x256xf32>,
    return
  }
  func.func @transform_0(%arg0: i32) -> (i32, i32) {
    %c0_i32 = arith.constant 0 : i32
    %c0_i32_0 = arith.constant 0 : i32
    %c0_i32_1 = arith.constant 0 : i32
    return %c0_i32, %c0_i32_0 : i32, i32
  }
  func.func @transform_1(%arg0: i32) -> (i32, i32, i32) {
    %c0_i32 = arith.constant 0 : i32
    %c0_i32_0 = arith.constant 0 : i32
    %c0_i32_1 = arith.constant 0 : i32
    return %arg0, %c0_i32, %c0_i32_0 : i32, i32, i32
  }
  func.func @transform_2(%arg0: i32) -> (i32, i32, i32) {
    %c0_i32 = arith.constant 0 : i32
    %c0_i32_0 = arith.constant 0 : i32
    %c0_i32_1 = arith.constant 0 : i32
    return %arg0, %c0_i32, %c0_i32_0 : i32, i32, i32
  }
}

</mosaic_0001>

<bundles_post_ra>
// kernel: tpu_custom_call.1
= control target key start
LH: loop header
LB: loop body
LE: loop exit
PB: predicated region body
PF: predicated region fallthrough
CT: control target
= control target key end

     0   :  { %7 = vsyncpa [#allocation3], 0  ;;  %s679_s0 = inlined_call_operand.vmem [shape: f32[8,37], index: 0, kind: input, shape index: {}]   ;;  %s680_s1 = inlined_call_operand.vmem [shape: f32[2,37,512], index: 1, kind: input, shape index: {}]   ;;  %s681_s2 = inlined_call_operand.hbm [shape: f32[2,8,256], index: 2, kind: output, shape index: {}]  }
   0x1   :  { %9 = vsyncpa [#allocation3 + $0x1], 0  ;;  %s561_s9 = smov 0   ;;  %s563_s10 = smov 0  }
   0x2   :  { %s565_s11 = smov 0   ;;  %s567_s12 = smov 0  }
   0x3 LB: > { %s582_s13 = sadd.s32 4294967295, %s542_s12   ;;  %s423_s14 = sadd.s32 4294967294, %s542_s12   ;;  %s542_s12 = sphi %s567_s12, %s687_s12   ;;  %s538_s11 = sphi %s565_s11, %s686_s11   ;;  %s534_s10 = sphi %s563_s10, %s685_s10   ;;  %s530_s9 = sphi %s561_s9, %s684_s9  }
   0x4   : > { %s586_s15 = sadd.s32 1, %s542_s12   ;;  %s69_s16 = sadd.s32 1, %s538_s11 }
   0x5   : > { %s66_s17 = ssub.s32 %s542_s12, %s586_s15  ;;  %p79_p0 = scmp.ne.s32.totalorder %s538_s11, %s534_s10 }
   0x6   : > { %p67_p1 = scmp.eq.s32.totalorder %s66_s17, 0  ;;  %p80_p2 = scmp.eq.s32.totalorder %s582_s13, 1 }
   0x7   : > { %p85_p3 = scmp.ne.s32.totalorder %s534_s10, %s530_s9  ;;  %p86_p4 = scmp.eq.s32.totalorder %s423_s14, 1 }
   0x8   : > { %s597_s18 = scalar_select %p67_p1, %s538_s11, %s69_s16  }
   0x9   : > { %p599_p5 = por %p80_p2, %p79_p0  ;;  %p603_p6 = por %p86_p4, %p85_p3 }
   0xa   : > { %p426_p7 = scmp.ge.s32.totalorder %s542_s12, 1  ;;  %p115_p8 = scmp.lt.s32.totalorder %s542_s12, 3 }
   0xc   : > { %p116_p9 = pnand %p426_p7, %p115_p8 }
   0xd   : > { %p137_p10 = scmp.lt.s32.totalorder (!%p116_p9), %s582_s13, 1  ;;  %s134_s28 = sand.u32 (!%p116_p9), 1, %s534_s10  }
   0xe   : > { %119 = sbr.rel (%p116_p9) target bundleno = 250 (0xfa), region = 28  ;;  %s427_s29 = sshll.u32 (!%p116_p9), %s134_s28, 4 }
   0xf   : > { %s440_s30 = sshll.u32 (!%p116_p9), %s582_s13, 8  ;;  %s136_s3 = scalar_lea.vmem (!%p116_p9), [#allocation2], %s427_s29 }
  0x10   : > { %s364_s4 = sshll.u32 (!%p116_p9), %s136_s3, 4  ;;  %s644_s7 = scalar_lea.hbm (!%p116_p9), %s681_s2, %s440_s30  ;;  %s365_s4 = int_to_ptr.vmem [resolvable:$true] %s364_s4 }
  0x11   : > { %s350_s8 = scalar_lea.sflag (!%p116_p9), [#allocation3], %s134_s28  ;;  %s482_s14 = scalar_lea.vmem (!%p116_p9), %s365_s4, 256 }
  0x12   : > { %p483_p11 = scmp.ne.s32.totalorder (!%p116_p9), %s365_s4, %s482_s14 }
  0x13   : > { %v544_v0 = vmov 0.0   ;;  %s138_s21 = scalar_select %p137_p10, %s582_s13, 1  ;;  %vm167_vm0 = vcmask 1044480   ;;  %v142_v21 = vld [vmem:[%s679_s0] sm:$0xff]  ;;  %vm163_vm1 = vcmask 302080   ;;  %vm344_vm2 = vcmask 1043456  }
  0x14   : > { %244 = vmatprep.mubr.f32.mxu0 %v544_v0  ;;  %315 = vmatprep.mubr.f32.mxu1 %v544_v0  ;;  %p484_p12 = pnand %p483_p11, %p599_p5  ;;  %s545_s13 = smov [#allocation2]  }
  0x15   : > { %s441_s22 = smul.u32 160, %s138_s21  ;;  %s486_s16 = sshll.u32 %s545_s13, 4  ;;  %s487_s16 = int_to_ptr.vmem [resolvable:$false] %s486_s16 }
  0x16   : > { %p485_p13 = pneg %p484_p12  ;;  %s488_s17 = scalar_lea.vmem %s487_s16, 512 }
  0x17   : > { %s614_s25 = scalar_lea.vmem %s680_s1, %s441_s22  ;;  %p489_p0 = scmp.lt.s32.totalorder %s365_s4, %s487_s16 }
  0x18   : > { %v160_v1 = vld [vmem:[%s614_s25 + $0x88] sm:$0x1f]  ;;  %v162_v2 = vld [vmem:[%s614_s25 + $0x98] sm:$0x1f]  ;;  %v159_v3 = vld [vmem:[%s614_s25 + $0x80] sm:$0x1f]  ;;  %p490_p1 = scmp.lt.s32.totalorder %s488_s17, %s482_s14 }
  0x19   : > { %429 = vmatprep.subr.msk.mxu0 %vm167_vm0, %v160_v1  ;;  %432 = vmatprep.subr.msk.mxu1 %vm167_vm0, %v162_v2  ;;  %v161_v4 = vld [vmem:[%s614_s25 + $0x90] sm:$0x1f]  ;;  %v156_v5 = vld [vmem:[%s614_s25 + $0x68] sm:$0xff]  ;;  %v158_v6 = vld [vmem:[%s614_s25 + $0x78] sm:$0xff] }
  0x1a   : > { %430 = vmatpush1.msk.msra.mxu0 %vm167_vm0, %v159_v3  ;;  %433 = vmatpush1.msk.msra.mxu1 %vm167_vm0, %v161_v4  ;;  %v155_v7 = vld [vmem:[%s614_s25 + $0x60] sm:$0xff]  ;;  %v157_v8 = vld [vmem:[%s614_s25 + $0x70] sm:$0xff]  ;;  %v152_v9 = vld [vmem:[%s614_s25 + $0x48] sm:$0xff]  ;;  %p491_p2 = por %p490_p1, %p489_p0 }
  0x1b   : > { %204 = vmatprep.subr.mxu0 %v156_v5  ;;  %275 = vmatprep.subr.mxu1 %v158_v6  ;;  %v154_v10 = vld [vmem:[%s614_s25 + $0x58] sm:$0xff]  ;;  %v151_v11 = vld [vmem:[%s614_s25 + $0x40] sm:$0xff]  ;;  %v153_v12 = vld [vmem:[%s614_s25 + $0x50] sm:$0xff] }
  0x1c   : > { %205 = vmatpush1.msra.mxu0 %v155_v7  ;;  %276 = vmatpush1.msra.mxu1 %v157_v8  ;;  %v148_v13 = vld [vmem:[%s614_s25 + $0x28] sm:$0xff]  ;;  %v150_v14 = vld [vmem:[%s614_s25 + $0x38] sm:$0xff]  ;;  %v147_v15 = vld [vmem:[%s614_s25 + $0x20] sm:$0xff]  ;;  %p492_p3 = pnand %p491_p2, %p485_p13 }
  0x1d   : > { %206 = vmatprep.subr.mxu0 %v152_v9  ;;  %277 = vmatprep.subr.mxu1 %v154_v10  ;;  %v149_v16 = vld [vmem:[%s614_s25 + $0x30] sm:$0xff]  ;;  %v144_v17 = vld [vmem:[%s614_s25 + $0x8] sm:$0xff]  ;;  %v146_v18 = vld [vmem:[%s614_s25 + $0x18] sm:$0xff] }
  0x1e   : > { %207 = vmatpush1.msra.mxu0 %v151_v11  ;;  %278 = vmatpush1.msra.mxu1 %v153_v12  ;;  %v143_v19 = vld [vmem:[%s614_s25] sm:$0xff]  ;;  %v145_v20 = vld [vmem:[%s614_s25 + $0x10] sm:$0xff] }
  0x1f   : > { %208 = vmatprep.subr.mxu0 %v148_v13  ;;  %279 = vmatprep.subr.mxu1 %v150_v14 }
  0x20   : > { %209 = vmatpush1.msra.mxu0 %v147_v15  ;;  %280 = vmatpush1.msra.mxu1 %v149_v16 }
  0x21   : > { %210 = vmatprep.subr.mxu0 %v144_v17  ;;  %281 = vmatprep.subr.mxu1 %v146_v18 }
  0x22   : > { %211 = vmatpush1.msra.mxu0 %v143_v19  ;;  %282 = vmatpush1.msra.mxu1 %v145_v20 }
  0x23   : > { %431 = vmatmul.mubr.msk.f32.vlgmr.msra.gmra.mxu0 %vm163_vm1, %v142_v21  ;;  %434 = vmatmul.mubr.msk.f32.vlgmr.msra.gmra.mxu1 %vm163_vm1, %v142_v21 }
  0xe3   : > { %v246_v22 = vpop.f32.mrf.mxu0  ;;  %v317_v23 = vpop.f32.mrf.mxu1 }
  0xe4   : > { %v332_v24 = vrot.slane %v246_v22, 4  ;;  %v324_v25 = vrot.slane %v317_v23, 4 }
  0xe5   : > { %v248_v26 = vpop.f32.mrf.mxu0  ;;  %v319_v27 = vpop.f32.mrf.mxu1 }
  0xe6   : > { %v336_v28 = vadd.f32 %v332_v24, %v317_v23  ;;  %v333_v29 = vrot.slane %v248_v26, 4  ;;  %v325_v30 = vrot.slane %v319_v27, 4  ;;  %v328_v31 = vsub.f32 %v246_v22, %v324_v25 }
  0xe8   : > { %v340_v32 = vrot.slane %v336_v28, 4  ;;  %v337_v33 = vadd.f32 %v333_v29, %v319_v27  ;;  %v329_v34 = vsub.f32 %v248_v26, %v325_v30 }
  0xea   : > { %v341_v35 = vrot.slane %v337_v33, 4  ;;  %v345_v36 = vsel %vm344_vm2, %v328_v31, %v340_v32 }
  0xeb   : > { %347 = vst [vmem:[%s136_s3] sm:$0xff] %v345_v36 }
  0xec   : > { %v346_v37 = vsel %vm344_vm2, %v329_v34, %v341_v35 }
  0xed   : > { %348 = vst [vmem:[%s136_s3 + $0x8] sm:$0xff] %v346_v37 }
  0xee   : > { %495 = shalt.err (!%p492_p3)
}
  0xef   : > { %s496_s21 = scalar_lea.hbm %s644_s7, 256  ;;  %s500_s24 = scalar_lea.hbm %s681_s2, 512 }
  0xf0   : > { %p497_p4 = scmp.ne.s32.totalorder %s644_s7, %s496_s21  ;;  %p501_p9 = scmp.lt.s32.totalorder %s644_s7, %s681_s2 }
  0xf1   : > { %p502_p10 = scmp.lt.s32.totalorder %s500_s24, %s496_s21 }
  0xf2   : > { %p498_p7 = pnand %p497_p4, %p599_p5 }
  0xf3   : > { %p503_p11 = por %p502_p10, %p501_p9 }
  0xf4   : > { %p499_p8 = pneg %p498_p7 }
  0xf6   : > { %p504_p12 = pnand %p503_p11, %p499_p8 }
  0xf8   : > { %507 = shalt.err (!%p504_p12)
}
  0xf9   : > { %442 = dma.vmem_to_hbm [thread:$0]  (%p599_p5), %s365_s4, 256, %s644_s7, %s350_s8  }
  0xfa PF: > { %p448_p13 = scmp.ge.s32.totalorder %s542_s12, 2  ;;  %s376_s27 = sand.u32 1, %s530_s9  }
  0xfb   : > { %s377_s28 = scalar_lea.sflag [#allocation3], %s376_s27 }
  0xfc   : > { %p445_p0 = pnand %p448_p13, %p603_p6 }
  0xfe   : > { %p446_p1 = pneg %p445_p0 }
 0x100   : > { %525 = dma.done.wait (%p446_p1), %s377_s28, 256  }
 0x101   : > { %527 = vsyncadd (%p446_p1), %s377_s28, 4294967040  ;;  %p12_p2 = scmp.ge.s32.totalorder %s586_s15, 4   ;;  %s684_s9 = smov %s534_s10 }
 0x102   : > { %s685_s10 = smov %s538_s11  ;;  %s686_s11 = smov %s597_s18 }
 0x103   : > { %s687_s12 = smov %s586_s15  ;;  %14 = sbr.rel (!%p12_p2) target bundleno = 3 (0x3), region = 63 }
 0x108   :  { %382 = vsyncpa [#allocation3], 1 }
 0x109   :  { %384 = vsyncpa [#allocation3 + $0x1], 1 }

</bundles_post_ra>
